<compile_context>
chip_gen: v6e
topology: v6e:2x2x1
jax: 0.10.0
libtpu: 0.0.40
codegen_flags: <defaults>
</compile_context>

<pallas_src>
import jax
import jax.numpy as jnp
from jax.experimental import pallas as pl
from jax.experimental.pallas import tpu as pltpu


def _round_up(x, m):
    return ((x + m - 1) // m) * m


# ----------------------------------------------------------------------------- kernel
def gaussian_policy_kernel(obs_ref, w1_ref, b1_ref, w2_ref, b2_ref, w3_ref, b3_ref, out_ref):
    # Weights may optionally be bf16; always accumulate in f32 on the MXU and add f32 biases.
    # The .astype calls are no-ops in the default all-f32 path.
    x = obs_ref[...].astype(w1_ref.dtype)

    h1 = jnp.dot(x, w1_ref[...], preferred_element_type=jnp.float32) + b1_ref[...]
    h1 = jnp.maximum(h1, 0.0).astype(w2_ref.dtype)

    h2 = jnp.dot(h1, w2_ref[...], preferred_element_type=jnp.float32) + b2_ref[...]
    h2 = jnp.maximum(h2, 0.0).astype(w3_ref.dtype)

    # Fused (mu | log_std) head, unpadded 2*act_dim output columns.
    y = jnp.dot(h2, w3_ref[...], preferred_element_type=jnp.float32) + b3_ref[...]
    out_ref[...] = jnp.tanh(y)


# ----------------------------------------------------------------------------- wrapper
def gaussian_policy_forward(obs, padded_params, act_dim, *, tile_m=4096):
    """obs: [B, obs_dim] f32. padded_params from prepare_params().
    Returns (mu [B, act_dim], log_std [B, act_dim]) in f32."""
    w1, b1, w2, b2, w3, b3 = padded_params
    B, obs_dim = obs.shape
    out_dim = w3.shape[1]                      # == 2 * act_dim (unpadded head)

    # Batch tile: multiple of 8 sublanes; keep >= 2 grid steps when possible so v7x's
    # 2 TensorCores both get work via dimension_semantics=("parallel",).
    half = _round_up(pl.cdiv(B, 2), 8)
    tile_m = max(8, (min(tile_m, half) // 8) * 8)
    grid = (pl.cdiv(B, tile_m),)               # ragged last block: reads padded, writes masked

    flops = 2 * B * (obs_dim * w1.shape[1] + w2.shape[0] * w2.shape[1] + w3.shape[0] * out_dim)
    bytes_accessed = (obs.size * obs.dtype.itemsize
                      + sum(a.size * a.dtype.itemsize for a in padded_params)
                      + B * out_dim * 4)

    out = pl.pallas_call(
        gaussian_policy_kernel,
        out_shape=jax.ShapeDtypeStruct((B, out_dim), jnp.float32),
        grid=grid,
        in_specs=[
            # obs tiled over the batch grid
            pl.BlockSpec((tile_m, obs_dim), lambda i: (i, 0)),
            # weights / biases: constant index_map -> VMEM-resident, fetched once
            pl.BlockSpec(w1.shape, lambda i: (0, 0)),
            pl.BlockSpec(b1.shape, lambda i: (0, 0)),
            pl.BlockSpec(w2.shape, lambda i: (0, 0)),
            pl.BlockSpec(b2.shape, lambda i: (0, 0)),
            pl.BlockSpec(w3.shape, lambda i: (0, 0)),
            pl.BlockSpec(b3.shape, lambda i: (0, 0)),
        ],
        out_specs=pl.BlockSpec((tile_m, out_dim), lambda i: (i, 0)),
        compiler_params=pltpu.CompilerParams(
            dimension_semantics=("parallel",)),      # megacore sharding on v7x
        cost_estimate=pl.CostEstimate(
            flops=flops,
            transcendentals=B * out_dim,              # tanh
            bytes_accessed=bytes_accessed),
    )(obs, w1, b1, w2, b2, w3, b3)

    mu = out[:, :act_dim]
    # The module applies clamp AFTER tanh, so it is mathematically a no-op; kept here (free)
    # in the wrapper for exact fidelity with the PyTorch source.
    log_std = jnp.clip(out[:, act_dim:], -20.0, 2.0)
    return mu, log_std


# ----------------------------------------------------------------------------- params
def init_params(key, obs_dim, act_dim, hidden=(64, 64)):
    """PyTorch-style init U(-1/sqrt(fan_in), 1/sqrt(fan_in)); weights stored as
    [in_features, out_features] so the kernel computes y = x @ W + b directly."""
    sizes = [obs_dim, *hidden, 2 * act_dim]
    keys = jax.random.split(key, 2 * (len(sizes) - 1))
    params = []
    for i in range(len(sizes) - 1):
        fan_in, fan_out = sizes[i], sizes[i + 1]
        bound = 1.0 / (fan_in ** 0.5)
        w = jax.random.uniform(keys[2 * i], (fan_in, fan_out),
                               minval=-bound, maxval=bound, dtype=jnp.float32)
        b = jax.random.uniform(keys[2 * i + 1], (1, fan_out),
                               minval=-bound, maxval=bound, dtype=jnp.float32)
        params += [w, b]
    return tuple(params)


def prepare_params(raw_params, obs_dim, act_dim, hidden=(64, 64), compute_dtype=jnp.float32):
    """Zero-pad hidden widths up to 128 lanes; the (mu|log_std) head keeps its true 2*act_dim
    output columns (unpadded -> 8x less output HBM writeback).  Default compute_dtype is f32
    (the kernel is not MXU-bound, so bf16 is not a speed win; on v5e bf16 only adds VALU cast
    work).  Biases stay f32 (added after f32 MXU accumulation)."""
    w1, b1, w2, b2, w3, b3 = raw_params
    h1p = _round_up(hidden[0], 128)
    h2p = _round_up(hidden[1], 128)

    def pad2(a, rows, cols):
        return jnp.pad(a, ((0, rows - a.shape[0]), (0, cols - a.shape[1])))

    return (pad2(w1, obs_dim, h1p).astype(compute_dtype),
            pad2(b1, 1, h1p).astype(jnp.float32),
            pad2(w2, h1p, h2p).astype(compute_dtype),
            pad2(b2, 1, h2p).astype(jnp.float32),
            pad2(w3, h2p, 2 * act_dim).astype(compute_dtype),
            b3.astype(jnp.float32))


# ----------------------------------------------------------------------------- reference
def reference_forward(obs, raw_params, act_dim):
    """Pure-JAX reference, same math as the PyTorch module."""
    w1, b1, w2, b2, w3, b3 = raw_params
    h1 = jnp.maximum(obs @ w1 + b1, 0.0)
    h2 = jnp.maximum(h1 @ w2 + b2, 0.0)
    x = jnp.tanh(h2 @ w3 + b3)
    mu = x[:, :act_dim]
    log_std = jnp.clip(x[:, act_dim:], -20.0, 2.0)
    return mu, log_std


if __name__ == "__main__":
    key = jax.random.PRNGKey(0)
    k_obs, k_params = jax.random.split(key)

    batch, obs_dim, act_dim = 200, 16, 8     # batch not a tile multiple -> exercises ragged-edge masking
    hidden = (64, 64)

    obs = jax.random.normal(k_obs, (batch, obs_dim), dtype=jnp.float32)
    raw = init_params(k_params, obs_dim, act_dim, hidden)
    mu_ref, ls_ref = reference_forward(obs, raw, act_dim)

    # Default f32 path (recommended on all generations; tight check).
    p_f32 = prepare_params(raw, obs_dim, act_dim, hidden)
    mu, ls = gaussian_policy_forward(obs, p_f32, act_dim)
    mu = jax.block_until_ready(mu)
    ls = jax.block_until_ready(ls)
    assert jnp.allclose(mu, mu_ref, atol=1e-4, rtol=1e-4)
    assert jnp.allclose(ls, ls_ref, atol=1e-4, rtol=1e-4)

    # Optional bf16-weight path (smaller one-time weight DMA; not a wall-clock win) -- loose check.
    p_bf16 = prepare_params(raw, obs_dim, act_dim, hidden, compute_dtype=jnp.bfloat16)
    mu_b, ls_b = gaussian_policy_forward(obs, p_bf16, act_dim)
    mu_b = jax.block_until_ready(mu_b)
    ls_b = jax.block_until_ready(ls_b)
    assert jnp.allclose(mu_b, mu_ref, atol=5e-2, rtol=5e-2)
    assert jnp.allclose(ls_b, ls_ref, atol=5e-2, rtol=5e-2)

    # TODO(synk): predict_action's Normal.rsample / log_prob sampling path is host-level
    # distribution logic and is intentionally left outside the kernel.
    print("KERNEL_OK")
</pallas_src>

<mosaic_0001>
module attributes {stable_mosaic.version = 11 : i64} {
  func.func @gaussian_policy_kernel(%arg0: i32, %arg1: memref<104x16xf32, #tpu.memory_space<vmem>>, %arg2: memref<16x128xf32, #tpu.memory_space<vmem>>, %arg3: memref<1x128xf32, #tpu.memory_space<vmem>>, %arg4: memref<128x128xf32, #tpu.memory_space<vmem>>, %arg5: memref<1x128xf32, #tpu.memory_space<vmem>>, %arg6: memref<128x16xf32, #tpu.memory_space<vmem>>, %arg7: memref<1x16xf32, #tpu.memory_space<vmem>>, %arg8: memref<104x16xf32, #tpu.memory_space<vmem>>) attributes {dimension_semantics = [#tpu.dimension_semantics<parallel>], iteration_bounds = array<i64: 2>, scalar_prefetch = 0 : i64, scratch_operands = 0 : i64, tpu.core_type = #tpu.core_type<tc>, window_params = [{transform_indices = @transform_0, window_bounds = array<i64: 104, 16>}, {pipeline_mode = #tpu.pipeline_mode<synchronous>, transform_indices = @transform_1, window_bounds = array<i64: 16, 128>}, {pipeline_mode = #tpu.pipeline_mode<synchronous>, transform_indices = @transform_2, window_bounds = array<i64: 1, 128>}, {pipeline_mode = #tpu.pipeline_mode<synchronous>, transform_indices = @transform_3, window_bounds = array<i64: 128, 128>}, {pipeline_mode = #tpu.pipeline_mode<synchronous>, transform_indices = @transform_4, window_bounds = array<i64: 1, 128>}, {pipeline_mode = #tpu.pipeline_mode<synchronous>, transform_indices = @transform_5, window_bounds = array<i64: 128, 16>}, {pipeline_mode = #tpu.pipeline_mode<synchronous>, transform_indices = @transform_6, window_bounds = array<i64: 1, 16>}, {transform_indices = @transform_7, window_bounds = array<i64: 104, 16>}]} {
    %c0 = arith.constant 0 : index
    %c0_0 = arith.constant 0 : index
    %0 = vector.load %arg1[%c0, %c0_0] : memref<104x16xf32, #tpu.memory_space<vmem>>, vector<104x16xf32>
    %c0_1 = arith.constant 0 : index
    %c0_2 = arith.constant 0 : index
    %1 = vector.load %arg2[%c0_1, %c0_2] : memref<16x128xf32, #tpu.memory_space<vmem>>, vector<16x128xf32>
    %cst = arith.constant dense<0.000000e+00> : vector<104x128xf32>
    %2 = tpu.matmul %0, %1, %cst {dimension_numbers = #tpu.dot_dimension_numbers<[1], [0], [0], [1], [0, 0, 1, 1], [], []>} : vector<104x16xf32>, vector<16x128xf32>, vector<104x128xf32> -> vector<104x128xf32>
    %c0_3 = arith.constant 0 : index
    %c0_4 = arith.constant 0 : index
    %3 = vector.load %arg3[%c0_3, %c0_4] : memref<1x128xf32, #tpu.memory_space<vmem>>, vector<1x128xf32>
    %4 = vector.broadcast %3 : vector<1x128xf32> to vector<104x128xf32>
    %5 = arith.addf %2, %4 : vector<104x128xf32>
    %cst_5 = arith.constant 0.000000e+00 : f32
    %6 = vector.broadcast %cst_5 : f32 to vector<104x128xf32>
    %7 = arith.maximumf %5, %6 : vector<104x128xf32>
    %c0_6 = arith.constant 0 : index
    %c0_7 = arith.constant 0 : index
    %8 = vector.load %arg4[%c0_6, %c0_7] : memref<128x128xf32, #tpu.memory_space<vmem>>, vector<128x128xf32>
    %cst_8 = arith.constant dense<0.000000e+00> : vector<104x128xf32>
    %9 = tpu.matmul %7, %8, %cst_8 {dimension_numbers = #tpu.dot_dimension_numbers<[1], [0], [0], [1], [0, 0, 1, 1], [], []>} : vector<104x128xf32>, vector<128x128xf32>, vector<104x128xf32> -> vector<104x128xf32>
    %c0_9 = arith.constant 0 : index
    %c0_10 = arith.constant 0 : index
    %10 = vector.load %arg5[%c0_9, %c0_10] : memref<1x128xf32, #tpu.memory_space<vmem>>, vector<1x128xf32>
    %11 = vector.broadcast %10 : vector<1x128xf32> to vector<104x128xf32>
    %12 = arith.addf %9, %11 : vector<104x128xf32>
    %cst_11 = arith.constant 0.000000e+00 : f32
    %13 = vector.broadcast %cst_11 : f32 to vector<104x128xf32>
    %14 = arith.maximumf %12, %13 : vector<104x128xf32>
    %c0_12 = arith.constant 0 : index
    %c0_13 = arith.constant 0 : index
    %15 = vector.load %arg6[%c0_12, %c0_13] : memref<128x16xf32, #tpu.memory_space<vmem>>, vector<128x16xf32>
    %cst_14 = arith.constant dense<0.000000e+00> : vector<104x16xf32>
    %16 = tpu.matmul %14, %15, %cst_14 {dimension_numbers = #tpu.dot_dimension_numbers<[1], [0], [0], [1], [0, 0, 1, 1], [], []>} : vector<104x128xf32>, vector<128x16xf32>, vector<104x16xf32> -> vector<104x16xf32>
    %c0_15 = arith.constant 0 : index
    %c0_16 = arith.constant 0 : index
    %17 = vector.load %arg7[%c0_15, %c0_16] : memref<1x16xf32, #tpu.memory_space<vmem>>, vector<1x16xf32>
    %18 = vector.broadcast %17 : vector<1x16xf32> to vector<104x16xf32>
    %19 = arith.addf %16, %18 : vector<104x16xf32>
    %20 = math.tanh %19 : vector<104x16xf32>
    %c0_17 = arith.constant 0 : index
    %c0_18 = arith.constant 0 : index
    %21 = vector.load %arg8[%c0_17, %c0_18] : memref<104x16xf32, #tpu.memory_space<vmem>>, vector<104x16xf32>
    tpu.vector_store %arg8[%c0_17, %c0_18], %20 {strides = array<i32>} : memref<104x16xf32, #tpu.memory_space<vmem>>, vector<104x16xf32>,
    return
  }
  func.func @transform_0(%arg0: i32) -> (i32, i32) {
    %c0_i32 = arith.constant 0 : i32
    %c0_i32_0 = arith.constant 0 : i32
    return %arg0, %c0_i32 : i32, i32
  }
  func.func @transform_1(%arg0: i32) -> (i32, i32) {
    %c0_i32 = arith.constant 0 : i32
    %c0_i32_0 = arith.constant 0 : i32
    %c0_i32_1 = arith.constant 0 : i32
    return %c0_i32, %c0_i32_0 : i32, i32
  }
  func.func @transform_2(%arg0: i32) -> (i32, i32) {
    %c0_i32 = arith.constant 0 : i32
    %c0_i32_0 = arith.constant 0 : i32
    %c0_i32_1 = arith.constant 0 : i32
    return %c0_i32, %c0_i32_0 : i32, i32
  }
  func.func @transform_3(%arg0: i32) -> (i32, i32) {
    %c0_i32 = arith.constant 0 : i32
    %c0_i32_0 = arith.constant 0 : i32
    %c0_i32_1 = arith.constant 0 : i32
    return %c0_i32, %c0_i32_0 : i32, i32
  }
  func.func @transform_4(%arg0: i32) -> (i32, i32) {
    %c0_i32 = arith.constant 0 : i32
    %c0_i32_0 = arith.constant 0 : i32
    %c0_i32_1 = arith.constant 0 : i32
    return %c0_i32, %c0_i32_0 : i32, i32
  }
  func.func @transform_5(%arg0: i32) -> (i32, i32) {
    %c0_i32 = arith.constant 0 : i32
    %c0_i32_0 = arith.constant 0 : i32
    %c0_i32_1 = arith.constant 0 : i32
    return %c0_i32, %c0_i32_0 : i32, i32
  }
  func.func @transform_6(%arg0: i32) -> (i32, i32) {
    %c0_i32 = arith.constant 0 : i32
    %c0_i32_0 = arith.constant 0 : i32
    %c0_i32_1 = arith.constant 0 : i32
    return %c0_i32, %c0_i32_0 : i32, i32
  }
  func.func @transform_7(%arg0: i32) -> (i32, i32) {
    %c0_i32 = arith.constant 0 : i32
    %c0_i32_0 = arith.constant 0 : i32
    return %arg0, %c0_i32 : i32, i32
  }
}

</mosaic_0001>

<bundles_post_ra>
// kernel: tpu_custom_call.1
= control target key start
LH: loop header
LB: loop body
LE: loop exit
PB: predicated region body
PF: predicated region fallthrough
CT: control target
= control target key end

     0   :  { %s1664_s24 = smov 0   ;;  %s1666_s25 = smov 0   ;;  %s2117_s0 = inlined_call_operand.vmem [shape: f32[200,16], index: 0, kind: input, shape index: {}]   ;;  %s2118_s1 = inlined_call_operand.vmem [shape: f32[16,128], index: 1, kind: input, shape index: {}]   ;;  %s2119_s2 = inlined_call_operand.vmem [shape: f32[1,128], index: 2, kind: input, shape index: {}]   ;;  %s2120_s3 = inlined_call_operand.vmem [shape: f32[128,128], index: 3, kind: input, shape index: {}]   ;;  %s2121_s4 = inlined_call_operand.vmem [shape: f32[1,128], index: 4, kind: input, shape index: {}]   ;;  %s2122_s5 = inlined_call_operand.vmem [shape: f32[128,16], index: 5, kind: input, shape index: {}]   ;;  %s2123_s6 = inlined_call_operand.vmem [shape: f32[1,16], index: 6, kind: input, shape index: {}]   ;;  %s2124_s7 = inlined_call_operand.vmem [shape: f32[200,16], index: 7, kind: output, shape index: {}]  }
   0x1   :  { %s1668_s26 = smov 0  }
   0x2 LB: > { %s1677_s27 = sadd.s32 4294967295, %s1588_s26   ;;  %s1679_s28 = sadd.s32 1, %s1588_s26   ;;  %s1588_s26 = sphi %s1668_s26, %s2131_s26   ;;  %s1584_s25 = sphi %s1666_s25, %s2130_s25   ;;  %s1580_s24 = sphi %s1664_s24, %s2129_s24  }
   0x3   : > { %s173_s29 = ssub.s32 %s1588_s26, %s1679_s28  ;;  %s176_s30 = sadd.s32 1, %s1584_s25 }
   0x4   : > { %p174_p0 = scmp.eq.s32.totalorder %s173_s29, 0  ;;  %p186_p1 = scmp.ne.s32.totalorder %s1584_s25, %s1580_s24 }
   0x5   : > { %p187_p2 = scmp.eq.s32.totalorder %s1677_s27, 1  ;;  %p1119_p3 = scmp.ge.s32.totalorder %s1588_s26, 1 }
   0x6   : > { %s1687_s8 = scalar_select %p174_p0, %s1584_s25, %s176_s30  }
   0x7   : > { %p1689_p4 = por %p187_p2, %p186_p1  ;;  %p246_p5 = scmp.lt.s32.totalorder %s1588_s26, 3 }
   0x9   : > { %p247_p6 = pnand %p1119_p3, %p246_p5 }
   0xa   : > { %s1697_s12 = smul.u32 (!%p247_p6), 13, %s1677_s27  ;;  %s278_s10 = sand.u32 (!%p247_p6), 1, %s1580_s24  }
   0xb   : > { %250 = sbr.rel (%p247_p6) target bundleno = 728 (0x2d8), region = 48 }
   0xc   : > { %p286_p7 = scmp.lt.s32.totalorder (!%p247_p6), %s1697_s12, 24  ;;  %s1412_s11 = smul.u32 (!%p247_p6), 104, %s278_s10 }
   0xe   : > { %s1991_s13 = scalar_lea.vmem (!%p247_p6), [#allocation2], %s1412_s11  }
  0x10   : > { %v314_v0 = vld [vmem:[%s2118_s1 + $0x8] sm:$0xff]  ;;  %v1622_v1 = vmov 0.0   ;;  %v313_v2 = vld [vmem:[%s2118_s1] sm:$0xff]  ;;  %vm1623_vm0 = vmmov 0   ;;  %s287_s15 = scalar_select %p286_p7, %s1697_s12, 24  ;;  %vm322_vm1 = vcmask 130048  }
  0x11   : > { %1223 = vmatprep.subr.mxu0 %v1622_v1  ;;  %1227 = vmatprep.mubr.msk.f32.mxu0 %vm1623_vm0, %v1622_v1  ;;  %v520_v4 = vld [vmem:[%s2120_s3 + $0x78] sm:$0xff]  ;;  %v519_v7 = vld [vmem:[%s2120_s3 + $0x70] sm:$0xff]  ;;  %v518_v9 = vld [vmem:[%s2120_s3 + $0x68] sm:$0xff]  ;;  %s858_s24 = ssub.s32 (%p1689_p4), 25, %s1697_s12  ;;  %s1149_s14 = smul.u32 (%p1689_p4), 104, %s1677_s27 }
  0x12   : > { %1224 = vmatpush3.msra.mxu0 %v314_v0  ;;  %1408 = vmatprep.subr.mxu1 %v1622_v1  ;;  %s1120_s16 = sshll.u32 %s287_s15, 3  ;;  %v517_v11 = vld [vmem:[%s2120_s3 + $0x60] sm:$0xff]  ;;  %v516_v13 = vld [vmem:[%s2120_s3 + $0x58] sm:$0xff]  ;;  %v515_v15 = vld [vmem:[%s2120_s3 + $0x50] sm:$0xff]  ;;  %p859_p8 = scmp.lt.s32.totalorder (%p1689_p4), %s858_s24, 13 }
  0x13   : > { %1225 = vmatprep.subr.mxu0 %v1622_v1  ;;  %1410 = vmatpush3.msra.mxu1 %v314_v0  ;;  %s1717_s19 = scalar_lea.vmem %s2117_s0, %s1120_s16  ;;  %v514_v17 = vld [vmem:[%s2120_s3 + $0x48] sm:$0xff]  ;;  %v513_v19 = vld [vmem:[%s2120_s3 + $0x40] sm:$0xff]  ;;  %v512_v21 = vld [vmem:[%s2120_s3 + $0x38] sm:$0xff]  ;;  %s2035_s17 = scalar_lea.vmem (%p1689_p4), %s2124_s7, %s1149_s14  }
  0x14   : > { %1226 = vmatpush3.msra.mxu0 %v313_v2  ;;  %1409 = vmatprep.subr.mxu1 %v1622_v1  ;;  %v300_v3 = vld [vmem:[%s1717_s19] sm:$0xff]  ;;  %v301_v5 = vld [vmem:[%s1717_s19 + $0x8] sm:$0xff]  ;;  %v302_v10 = vld [vmem:[%s1717_s19 + $0x10] sm:$0xff] }
  0x15   : > { %1411 = vmatpush3.msra.mxu1 %v313_v2  ;;  %1251 = vmatprep.mubr.msk.f32.mxu1 %vm1623_vm0, %v1622_v1  ;;  %v308_v6 = vld [vmem:[%s1717_s19 + $0x40] sm:$0xff]  ;;  %v309_v8 = vld [vmem:[%s1717_s19 + $0x48] sm:$0xff]  ;;  %v310_v12 = vld [vmem:[%s1717_s19 + $0x50] sm:$0xff] }
  0x16   : > { %1266 = vmatprep.subr.mxu1 %v1622_v1  ;;  %1337 = vmatprep.subr.mxu0 %v1622_v1  ;;  %v303_v14 = vld [vmem:[%s1717_s19 + $0x18] sm:$0xff]  ;;  %v304_v18 = vld [vmem:[%s1717_s19 + $0x20] sm:$0xff]  ;;  %v305_v22 = vld [vmem:[%s1717_s19 + $0x28] sm:$0xff] }
  0x17   : > { %1228 = vmatmul.mubr.msk.f32.vlgmr.msra.gmra.mxu0 %vm322_vm1, %v300_v3  ;;  %1252 = vmatmul.mubr.msk.f32.vlgmr.msra.gmra.mxu1 %vm322_vm1, %v308_v6  ;;  %v311_v16 = vld [vmem:[%s1717_s19 + $0x58] sm:$0xff]  ;;  %v312_v20 = vld [vmem:[%s1717_s19 + $0x60] sm:$0xff]  ;;  %v511_v23 = vld [vmem:[%s2120_s3 + $0x30] sm:$0xff] }
  0x18   : > { %1230 = vmatprep.mubr.msk.f32.mxu0 %vm1623_vm0, %v1622_v1  ;;  %1254 = vmatprep.mubr.msk.f32.mxu1 %vm1623_vm0, %v1622_v1  ;;  %v510_v24 = vld [vmem:[%s2120_s3 + $0x28] sm:$0xff]  ;;  %v306_v25 = vld [vmem:[%s1717_s19 + $0x30] sm:$0xff]  ;;  %v509_v26 = vld [vmem:[%s2120_s3 + $0x20] sm:$0xff] }
  0x19   : > { %1267 = vmatpush3.msra.mxu1 %v520_v4  ;;  %v508_v27 = vld [vmem:[%s2120_s3 + $0x18] sm:$0xff]  ;;  %v507_v29 = vld [vmem:[%s2120_s3 + $0x10] sm:$0xff]  ;;  %v506_v30 = vld [vmem:[%s2120_s3 + $0x8] sm:$0xff] }
  0x1a   : > { %1268 = vmatprep.subr.mxu1 %v1622_v1  ;;  %v307_v28 = vld [vmem:[%s1717_s19 + $0x38] sm:$0xff]  ;;  %v505_v31 = vld [vmem:[%s2120_s3] sm:$0xff]  ;;  %v685_v33 = vld [vmem:[%s2122_s5 + $0x70] sm:$0xff] }
  0x1b   : > { %1231 = vmatmul.mubr.msk.f32.gmra.mxu0 %vm322_vm1, %v301_v5  ;;  %1269 = vmatpush3.msra.mxu1 %v519_v7  ;;  %v686_v32 = vld [vmem:[%s2122_s5 + $0x78] sm:$0xff]  ;;  %v684_v34 = vld [vmem:[%s2122_s5 + $0x68] sm:$0xff]  ;;  %v683_v35 = vld [vmem:[%s2122_s5 + $0x60] sm:$0xff] }
  0x1c   : > { %1233 = vmatprep.mubr.msk.f32.mxu0 %vm1623_vm0, %v1622_v1  ;;  %1255 = vmatmul.mubr.msk.f32.gmra.mxu1 %vm322_vm1, %v309_v8  ;;  %v682_v36 = vld [vmem:[%s2122_s5 + $0x58] sm:$0xff]  ;;  %v681_v37 = vld [vmem:[%s2122_s5 + $0x50] sm:$0xff]  ;;  %v680_v38 = vld [vmem:[%s2122_s5 + $0x48] sm:$0xff] }
  0x1d   : > { %1270 = vmatprep.subr.mxu1 %v1622_v1  ;;  %1257 = vmatprep.mubr.msk.f32.mxu1 %vm1623_vm0, %v1622_v1  ;;  %v679_v39 = vld [vmem:[%s2122_s5 + $0x40] sm:$0xff]  ;;  %v678_v40 = vld [vmem:[%s2122_s5 + $0x38] sm:$0xff]  ;;  %v677_v41 = vld [vmem:[%s2122_s5 + $0x30] sm:$0xff] }
  0x1e   : > { %1271 = vmatpush3.msra.mxu1 %v518_v9  ;;  %1338 = vmatpush3.msra.mxu0 %v686_v32  ;;  %v676_v42 = vld [vmem:[%s2122_s5 + $0x28] sm:$0xff]  ;;  %v675_v43 = vld [vmem:[%s2122_s5 + $0x20] sm:$0xff]  ;;  %v674_v44 = vld [vmem:[%s2122_s5 + $0x18] sm:$0xff] }
  0x1f   : > { %1234 = vmatmul.mubr.msk.f32.gmra.mxu0 %vm322_vm1, %v302_v10  ;;  %1272 = vmatprep.subr.mxu1 %v1622_v1  ;;  %v673_v45 = vld [vmem:[%s2122_s5 + $0x10] sm:$0xff]  ;;  %v1893_v46 = vld [vmem:[%s2119_s2] ss:$0 sm:$0xff] }
  0x20   : > { %1236 = vmatprep.mubr.msk.f32.mxu0 %vm1623_vm0, %v1622_v1  ;;  %1273 = vmatpush3.msra.mxu1 %v517_v11 }
  0x21   : > { %1258 = vmatmul.mubr.msk.f32.gmra.mxu1 %vm322_vm1, %v310_v12  ;;  %1274 = vmatprep.subr.mxu1 %v1622_v1 }
  0x22   : > { %1260 = vmatprep.mubr.msk.f32.mxu1 %vm1623_vm0, %v1622_v1  ;;  %1275 = vmatpush3.msra.mxu1 %v516_v13 }
  0x23   : > { %1237 = vmatmul.mubr.msk.f32.gmra.mxu0 %vm322_vm1, %v303_v14  ;;  %1276 = vmatprep.subr.mxu1 %v1622_v1 }
  0x24   : > { %1239 = vmatprep.mubr.msk.f32.mxu0 %vm1623_vm0, %v1622_v1  ;;  %1277 = vmatpush3.msra.mxu1 %v515_v15 }
  0x25   : > { %1261 = vmatmul.mubr.msk.f32.gmra.mxu1 %vm322_vm1, %v311_v16  ;;  %1278 = vmatprep.subr.mxu1 %v1622_v1 }
  0x26   : > { %1263 = vmatprep.mubr.msk.f32.mxu1 %vm1623_vm0, %v1622_v1  ;;  %1279 = vmatpush3.msra.mxu1 %v514_v17 }
  0x27   : > { %1240 = vmatmul.mubr.msk.f32.gmra.mxu0 %vm322_vm1, %v304_v18  ;;  %1280 = vmatprep.subr.mxu1 %v1622_v1 }
  0x28   : > { %1242 = vmatprep.mubr.msk.f32.mxu0 %vm1623_vm0, %v1622_v1  ;;  %1281 = vmatpush3.msra.mxu1 %v513_v19 }
  0x29   : > { %1264 = vmatmul.mubr.msk.f32.gmra.mxu1 %vm322_vm1, %v312_v20  ;;  %1282 = vmatprep.subr.mxu1 %v1622_v1 }
  0x2a   : > { %1283 = vmatpush3.msra.mxu1 %v512_v21  ;;  %1298 = vmatprep.mubr.msk.f32.mxu1 %vm1623_vm0, %v1622_v1 }
  0x2b   : > { %1243 = vmatmul.mubr.msk.f32.gmra.mxu0 %vm322_vm1, %v305_v22  ;;  %1284 = vmatprep.subr.mxu1 %v1622_v1 }
  0x2c   : > { %1245 = vmatprep.mubr.msk.f32.mxu0 %vm1623_vm0, %v1622_v1  ;;  %1285 = vmatpush3.msra.mxu1 %v511_v23 }
  0x2d   : > { %1286 = vmatprep.subr.mxu1 %v1622_v1  ;;  %1339 = vmatprep.subr.mxu0 %v1622_v1 }
  0x2e   : > { %1287 = vmatpush3.msra.mxu1 %v510_v24  ;;  %1340 = vmatpush3.msra.mxu0 %v685_v33 }
  0x2f   : > { %1246 = vmatmul.mubr.msk.f32.gmra.mxu0 %vm322_vm1, %v306_v25  ;;  %1288 = vmatprep.subr.mxu1 %v1622_v1 }
  0x30   : > { %1248 = vmatprep.mubr.msk.f32.mxu0 %vm1623_vm0, %v1622_v1  ;;  %1289 = vmatpush3.msra.mxu1 %v509_v26 }
  0x31   : > { %1290 = vmatprep.subr.mxu1 %v1622_v1  ;;  %1341 = vmatprep.subr.mxu0 %v1622_v1 }
  0x32   : > { %1291 = vmatpush3.msra.mxu1 %v508_v27  ;;  %1342 = vmatpush3.msra.mxu0 %v684_v34 }
  0x33   : > { %1249 = vmatmul.mubr.msk.f32.gmra.mxu0 %vm322_vm1, %v307_v28  ;;  %1292 = vmatprep.subr.mxu1 %v1622_v1 }
  0x34   : > { %1369 = vmatprep.mubr.msk.f32.mxu0 %vm1623_vm0, %v1622_v1  ;;  %1293 = vmatpush3.msra.mxu1 %v507_v29 }
  0x35   : > { %1294 = vmatprep.subr.mxu1 %v1622_v1  ;;  %1343 = vmatprep.subr.mxu0 %v1622_v1 }
  0x36   : > { %1295 = vmatpush3.msra.mxu1 %v506_v30  ;;  %1344 = vmatpush3.msra.mxu0 %v683_v35 }
  0x37   : > { %1296 = vmatprep.subr.mxu1 %v1622_v1  ;;  %1345 = vmatprep.subr.mxu0 %v1622_v1 }
  0x38   : > { %1297 = vmatpush3.msra.mxu1 %v505_v31  ;;  %1346 = vmatpush3.msra.mxu0 %v682_v36  ;;  %v672_v36 = vld [vmem:[%s2122_s5 + $0x8] sm:$0xff] }
  0x39   : > { %1347 = vmatprep.subr.mxu0 %v1622_v1 }
  0x3a   : > { %1348 = vmatpush3.msra.mxu0 %v681_v37  ;;  %v671_v37 = vld [vmem:[%s2122_s5] sm:$0xff] }
  0x3b   : > { %1349 = vmatprep.subr.mxu0 %v1622_v1 }
  0x3c   : > { %1350 = vmatpush3.msra.mxu0 %v680_v38  ;;  %v1942_v38 = vld [vmem:[%s2121_s4] ss:$0 sm:$0xff] }
  0x3d   : > { %1351 = vmatprep.subr.mxu0 %v1622_v1 }
  0x3e   : > { %1352 = vmatpush3.msra.mxu0 %v679_v39 }
  0x3f   : > { %1353 = vmatprep.subr.mxu0 %v1622_v1 }
  0x40   : > { %1354 = vmatpush3.msra.mxu0 %v678_v40 }
  0x41   : > { %1355 = vmatprep.subr.mxu0 %v1622_v1 }
  0x42   : > { %1356 = vmatpush3.msra.mxu0 %v677_v41 }
  0x43   : > { %1357 = vmatprep.subr.mxu0 %v1622_v1 }
  0x44   : > { %1358 = vmatpush3.msra.mxu0 %v676_v42 }
  0x45   : > { %1359 = vmatprep.subr.mxu0 %v1622_v1 }
  0x46   : > { %1360 = vmatpush3.msra.mxu0 %v675_v43 }
  0x47   : > { %1361 = vmatprep.subr.mxu0 %v1622_v1 }
  0x48   : > { %1362 = vmatpush3.msra.mxu0 %v674_v44 }
  0x49   : > { %1363 = vmatprep.subr.mxu0 %v1622_v1 }
  0x4a   : > { %1364 = vmatpush3.msra.mxu0 %v673_v45 }
  0x4b   : > { %1365 = vmatprep.subr.mxu0 %v1622_v1 }
  0x4c   : > { %1366 = vmatpush3.msra.mxu0 %v672_v36 }
  0x4d   : > { %1367 = vmatprep.subr.mxu0 %v1622_v1 }
  0x4e   : > { %1368 = vmatpush3.msra.mxu0 %v671_v37 }
  0xd7   : > { %v428_v47 = vpop.f32.mrf.mxu0  ;;  %v468_v50 = vpop.f32.mrf.mxu1 }
  0xd8   : > { %v429_v48 = vadd.f32 %v1893_v46, %v428_v47  ;;  %v469_v24 = vadd.f32 %v1893_v46, %v468_v50 }
  0xd9   : > { %v1229_v49 = vpop.f32.mrf.mxu0  ;;  %v1253_v53 = vpop.f32.mrf.mxu1 }
  0xda   : > { %v492_v51 = vmax.f32 %v429_v48, 0.0  ;;  %v500_v27 = vmax.f32 %v469_v24, 0.0 }
  0xdb   : > { %v433_v52 = vpop.f32.mrf.mxu0 }
  0xdc   : > { %v434_v54 = vadd.f32 %v1893_v46, %v433_v52  ;;  %1299 = vmatmul.mubr.f32.vlgmr.msra.gmra.mxu1 %v492_v51  ;;  %v473_v56 = vpop.f32.mrf.mxu1 }
  0xdd   : > { %v1232_v55 = vpop.f32.mrf.mxu0  ;;  %1301 = vmatprep.mubr.msk.f32.mxu1 %vm1623_vm0, %v1622_v1  ;;  %v474_v28 = vadd.f32 %v1893_v46, %v473_v56 }
  0xde   : > { %v493_v57 = vmax.f32 %v434_v54, 0.0  ;;  %v1256_v59 = vpop.f32.mrf.mxu1 }
  0xdf   : > { %v438_v58 = vpop.f32.mrf.mxu0  ;;  %v501_v29 = vmax.f32 %v474_v28, 0.0  ;;  %v1984_v28 = vld [vmem:[%s2123_s6] ss:$0 sm:$0xff] }
  0xe0   : > { %v439_v60 = vadd.f32 %v1893_v46, %v438_v58  ;;  %1302 = vmatmul.mubr.f32.gmra.mxu1 %v493_v57 }
  0xe1   : > { %v1235_v61 = vpop.f32.mrf.mxu0  ;;  %1304 = vmatprep.mubr.msk.f32.mxu1 %vm1623_vm0, %v1622_v1  ;;  %v478_v62 = vpop.f32.mrf.mxu1 }
  0xe2   : > { %v494_v63 = vmax.f32 %v439_v60, 0.0  ;;  %v479_v30 = vadd.f32 %v1893_v46, %v478_v62 }
  0xe3   : > { %v443_v0 = vpop.f32.mrf.mxu0  ;;  %v1259_v2 = vpop.f32.mrf.mxu1 }
  0xe4   : > { %v444_v3 = vadd.f32 %v1893_v46, %v443_v0  ;;  %1305 = vmatmul.mubr.f32.gmra.mxu1 %v494_v63  ;;  %v502_v31 = vmax.f32 %v479_v30, 0.0 }
  0xe5   : > { %v1238_v4 = vpop.f32.mrf.mxu0  ;;  %1307 = vmatprep.mubr.msk.f32.mxu1 %vm1623_vm0, %v1622_v1  ;;  %v483_v5 = vpop.f32.mrf.mxu1 }
  0xe6   : > { %v495_v6 = vmax.f32 %v444_v3, 0.0  ;;  %v484_v32 = vadd.f32 %v1893_v46, %v483_v5 }
  0xe7   : > { %v448_v7 = vpop.f32.mrf.mxu0  ;;  %v1262_v8 = vpop.f32.mrf.mxu1 }
  0xe8   : > { %v449_v9 = vadd.f32 %v1893_v46, %v448_v7  ;;  %1308 = vmatmul.mubr.f32.gmra.mxu1 %v495_v6  ;;  %v503_v33 = vmax.f32 %v484_v32, 0.0 }
  0xe9   : > { %v1241_v10 = vpop.f32.mrf.mxu0  ;;  %1310 = vmatprep.mubr.msk.f32.mxu1 %vm1623_vm0, %v1622_v1  ;;  %v488_v11 = vpop.f32.mrf.mxu1 }
  0xea   : > { %v496_v12 = vmax.f32 %v449_v9, 0.0  ;;  %v489_v34 = vadd.f32 %v1893_v46, %v488_v11 }
  0xeb   : > { %v453_v13 = vpop.f32.mrf.mxu0  ;;  %v1265_v14 = vpop.f32.mrf.mxu1 }
  0xec   : > { %v454_v15 = vadd.f32 %v1893_v46, %v453_v13  ;;  %1311 = vmatmul.mubr.f32.gmra.mxu1 %v496_v12  ;;  %v504_v35 = vmax.f32 %v489_v34, 0.0 }
  0xed   : > { %v1244_v16 = vpop.f32.mrf.mxu0  ;;  %1313 = vmatprep.mubr.msk.f32.mxu1 %vm1623_vm0, %v1622_v1 }
  0xee   : > { %v497_v17 = vmax.f32 %v454_v15, 0.0 }
  0xef   : > { %v458_v18 = vpop.f32.mrf.mxu0 }
  0xf0   : > { %v459_v19 = vadd.f32 %v1893_v46, %v458_v18  ;;  %1314 = vmatmul.mubr.f32.gmra.mxu1 %v497_v17 }
  0xf1   : > { %v1247_v20 = vpop.f32.mrf.mxu0  ;;  %1316 = vmatprep.mubr.msk.f32.mxu1 %vm1623_vm0, %v1622_v1 }
  0xf2   : > { %v498_v21 = vmax.f32 %v459_v19, 0.0 }
  0xf3   : > { %v463_v22 = vpop.f32.mrf.mxu0 }
  0xf4   : > { %v464_v23 = vadd.f32 %v1893_v46, %v463_v22  ;;  %1317 = vmatmul.mubr.f32.gmra.mxu1 %v498_v21 }
  0xf5   : > { %v1250_v25 = vpop.f32.mrf.mxu0  ;;  %1319 = vmatprep.mubr.msk.f32.mxu1 %vm1623_vm0, %v1622_v1 }
  0xf6   : > { %v499_v26 = vmax.f32 %v464_v23, 0.0 }
  0xf8   : > { %1320 = vmatmul.mubr.f32.gmra.mxu1 %v499_v26 }
  0xf9   : > { %1322 = vmatprep.mubr.msk.f32.mxu1 %vm1623_vm0, %v1622_v1 }
  0xfc   : > { %1323 = vmatmul.mubr.f32.gmra.mxu1 %v500_v27 }
  0xfd   : > { %1325 = vmatprep.mubr.msk.f32.mxu1 %vm1623_vm0, %v1622_v1 }
 0x100   : > { %1326 = vmatmul.mubr.f32.gmra.mxu1 %v501_v29 }
 0x101   : > { %1328 = vmatprep.mubr.msk.f32.mxu1 %vm1623_vm0, %v1622_v1 }
 0x104   : > { %1329 = vmatmul.mubr.f32.gmra.mxu1 %v502_v31 }
 0x105   : > { %1331 = vmatprep.mubr.msk.f32.mxu1 %vm1623_vm0, %v1622_v1 }
 0x108   : > { %1332 = vmatmul.mubr.f32.gmra.mxu1 %v503_v33 }
 0x109   : > { %1334 = vmatprep.mubr.msk.f32.mxu1 %vm1623_vm0, %v1622_v1 }
 0x10c   : > { %1335 = vmatmul.mubr.f32.gmra.mxu1 %v504_v35 }
 0x19c   : > { %v594_v39 = vpop.f32.mrf.mxu1 }
 0x19d   : > { %v595_v40 = vadd.f32 %v1942_v38, %v594_v39 }
 0x19e   : > { %v1300_v41 = vpop.f32.mrf.mxu1 }
 0x19f   : > { %v658_v42 = vmax.f32 %v595_v40, 0.0 }
 0x1a0   : > { %v599_v43 = vpop.f32.mrf.mxu1 }
 0x1a1   : > { %v600_v44 = vadd.f32 %v1942_v38, %v599_v43  ;;  %1370 = vmatmul.mubr.f32.vlgmr.msra.gmra.mxu0 %v658_v42 }
 0x1a2   : > { %v1303_v45 = vpop.f32.mrf.mxu1  ;;  %1372 = vmatprep.mubr.msk.f32.mxu0 %vm1623_vm0, %v1622_v1 }
 0x1a3   : > { %v659_v46 = vmax.f32 %v600_v44, 0.0 }
 0x1a4   : > { %v604_v47 = vpop.f32.mrf.mxu1 }
 0x1a5   : > { %v605_v48 = vadd.f32 %v1942_v38, %v604_v47  ;;  %1373 = vmatmul.mubr.f32.gmra.mxu0 %v659_v46 }
 0x1a6   : > { %v1306_v49 = vpop.f32.mrf.mxu1  ;;  %1375 = vmatprep.mubr.msk.f32.mxu0 %vm1623_vm0, %v1622_v1 }
 0x1a7   : > { %v660_v50 = vmax.f32 %v605_v48, 0.0 }
 0x1a8   : > { %v609_v51 = vpop.f32.mrf.mxu1 }
 0x1a9   : > { %v610_v52 = vadd.f32 %v1942_v38, %v609_v51  ;;  %1376 = vmatmul.mubr.f32.gmra.mxu0 %v660_v50 }
 0x1aa   : > { %v1309_v53 = vpop.f32.mrf.mxu1  ;;  %1378 = vmatprep.mubr.msk.f32.mxu0 %vm1623_vm0, %v1622_v1 }
 0x1ab   : > { %v661_v54 = vmax.f32 %v610_v52, 0.0 }
 0x1ac   : > { %v614_v55 = vpop.f32.mrf.mxu1 }
 0x1ad   : > { %v615_v56 = vadd.f32 %v1942_v38, %v614_v55  ;;  %1379 = vmatmul.mubr.f32.gmra.mxu0 %v661_v54 }
 0x1ae   : > { %v1312_v57 = vpop.f32.mrf.mxu1  ;;  %1381 = vmatprep.mubr.msk.f32.mxu0 %vm1623_vm0, %v1622_v1 }
 0x1af   : > { %v662_v58 = vmax.f32 %v615_v56, 0.0 }
 0x1b0   : > { %v619_v59 = vpop.f32.mrf.mxu1 }
 0x1b1   : > { %v620_v60 = vadd.f32 %v1942_v38, %v619_v59  ;;  %1382 = vmatmul.mubr.f32.gmra.mxu0 %v662_v58 }
 0x1b2   : > { %v1315_v61 = vpop.f32.mrf.mxu1  ;;  %1384 = vmatprep.mubr.msk.f32.mxu0 %vm1623_vm0, %v1622_v1 }
 0x1b3   : > { %v663_v62 = vmax.f32 %v620_v60, 0.0 }
 0x1b4   : > { %v624_v63 = vpop.f32.mrf.mxu1 }
 0x1b5   : > { %v625_v0 = vadd.f32 %v1942_v38, %v624_v63  ;;  %1385 = vmatmul.mubr.f32.gmra.mxu0 %v663_v62 }
 0x1b6   : > { %v1318_v2 = vpop.f32.mrf.mxu1  ;;  %1387 = vmatprep.mubr.msk.f32.mxu0 %vm1623_vm0, %v1622_v1 }
 0x1b7   : > { %v664_v3 = vmax.f32 %v625_v0, 0.0 }
 0x1b8   : > { %v629_v4 = vpop.f32.mrf.mxu1 }
 0x1b9   : > { %v630_v5 = vadd.f32 %v1942_v38, %v629_v4  ;;  %1388 = vmatmul.mubr.f32.gmra.mxu0 %v664_v3 }
 0x1ba   : > { %v1321_v6 = vpop.f32.mrf.mxu1  ;;  %1390 = vmatprep.mubr.msk.f32.mxu0 %vm1623_vm0, %v1622_v1 }
 0x1bb   : > { %v665_v7 = vmax.f32 %v630_v5, 0.0 }
 0x1bc   : > { %v634_v8 = vpop.f32.mrf.mxu1 }
 0x1bd   : > { %v635_v9 = vadd.f32 %v1942_v38, %v634_v8  ;;  %1391 = vmatmul.mubr.f32.gmra.mxu0 %v665_v7 }
 0x1be   : > { %v1324_v10 = vpop.f32.mrf.mxu1  ;;  %1393 = vmatprep.mubr.msk.f32.mxu0 %vm1623_vm0, %v1622_v1 }
 0x1bf   : > { %v666_v11 = vmax.f32 %v635_v9, 0.0 }
 0x1c0   : > { %v639_v12 = vpop.f32.mrf.mxu1 }
 0x1c1   : > { %v640_v13 = vadd.f32 %v1942_v38, %v639_v12  ;;  %1394 = vmatmul.mubr.f32.gmra.mxu0 %v666_v11 }
 0x1c2   : > { %v1327_v14 = vpop.f32.mrf.mxu1  ;;  %1396 = vmatprep.mubr.msk.f32.mxu0 %vm1623_vm0, %v1622_v1 }
 0x1c3   : > { %v667_v15 = vmax.f32 %v640_v13, 0.0 }
 0x1c4   : > { %v644_v16 = vpop.f32.mrf.mxu1 }
 0x1c5   : > { %v645_v17 = vadd.f32 %v1942_v38, %v644_v16  ;;  %1397 = vmatmul.mubr.f32.gmra.mxu0 %v667_v15 }
 0x1c6   : > { %v1330_v18 = vpop.f32.mrf.mxu1  ;;  %1399 = vmatprep.mubr.msk.f32.mxu0 %vm1623_vm0, %v1622_v1 }
 0x1c7   : > { %v668_v19 = vmax.f32 %v645_v17, 0.0 }
 0x1c8   : > { %v649_v20 = vpop.f32.mrf.mxu1 }
 0x1c9   : > { %v650_v21 = vadd.f32 %v1942_v38, %v649_v20  ;;  %1400 = vmatmul.mubr.f32.gmra.mxu0 %v668_v19 }
 0x1ca   : > { %v1333_v22 = vpop.f32.mrf.mxu1  ;;  %1402 = vmatprep.mubr.msk.f32.mxu0 %vm1623_vm0, %v1622_v1 }
 0x1cb   : > { %v669_v23 = vmax.f32 %v650_v21, 0.0 }
 0x1cc   : > { %v654_v24 = vpop.f32.mrf.mxu1 }
 0x1cd   : > { %v655_v25 = vadd.f32 %v1942_v38, %v654_v24  ;;  %1403 = vmatmul.mubr.f32.gmra.mxu0 %v669_v23 }
 0x1ce   : > { %v1336_v26 = vpop.f32.mrf.mxu1  ;;  %1405 = vmatprep.mubr.msk.f32.mxu0 %vm1623_vm0, %v1622_v1 }
 0x1cf   : > { %v670_v27 = vmax.f32 %v655_v25, 0.0 }
 0x1d1   : > { %1406 = vmatmul.mubr.f32.gmra.mxu0 %v670_v27 }
 0x261   : > { %v760_v29 = vpop.f32.mrf.mxu0 }
 0x262   : > { %v761_v30 = vadd.f32 %v1984_v28, %v760_v29 }
 0x263   : > { %v1371_v31 = vpop.f32.mrf.mxu0 }
 0x264   : > { %1504 = vtanh.f32 %v761_v30 }
 0x265   : > { %v765_v32 = vpop.f32.mrf.mxu0 }
 0x266   : > { %v766_v33 = vadd.f32 %v1984_v28, %v765_v32 }
 0x267   : > { %v1374_v34 = vpop.f32.mrf.mxu0 }
 0x268   : > { %1506 = vtanh.f32 %v766_v33 }
 0x269   : > { %v770_v35 = vpop.f32.mrf.mxu0 }
 0x26a   : > { %v771_v1 = vadd.f32 %v1984_v28, %v770_v35 }
 0x26b   : > { %v1377_v36 = vpop.f32.mrf.mxu0 }
 0x26c   : > { %1508 = vtanh.f32 %v771_v1 }
 0x26d   : > { %v775_v37 = vpop.f32.mrf.mxu0 }
 0x26e   : > { %v776_v38 = vadd.f32 %v1984_v28, %v775_v37 }
 0x26f   : > { %v1380_v39 = vpop.f32.mrf.mxu0 }
 0x270   : > { %1510 = vtanh.f32 %v776_v38 }
 0x271   : > { %v1505_v40 = vpop.eup %1504  ;;  %v780_v41 = vpop.f32.mrf.mxu0 }
 0x272   : > { %837 = vst.msk [vmem:[%s1991_s13] sm:$0xff] %vm322_vm1, %v1505_v40  ;;  %v781_v42 = vadd.f32 %v1984_v28, %v780_v41 }
 0x273   : > { %v1383_v43 = vpop.f32.mrf.mxu0 }
 0x274   : > { %1512 = vtanh.f32 %v781_v42 }
 0x275   : > { %v1507_v44 = vpop.eup %1506  ;;  %v785_v45 = vpop.f32.mrf.mxu0 }
 0x276   : > { %838 = vst.msk [vmem:[%s1991_s13 + $0x8] sm:$0xff] %vm322_vm1, %v1507_v44  ;;  %v786_v46 = vadd.f32 %v1984_v28, %v785_v45 }
 0x277   : > { %v1386_v47 = vpop.f32.mrf.mxu0 }
 0x278   : > { %1514 = vtanh.f32 %v786_v46 }
 0x279   : > { %v1509_v48 = vpop.eup %1508  ;;  %v790_v49 = vpop.f32.mrf.mxu0 }
 0x27a   : > { %839 = vst.msk [vmem:[%s1991_s13 + $0x10] sm:$0xff] %vm322_vm1, %v1509_v48  ;;  %v791_v50 = vadd.f32 %v1984_v28, %v790_v49 }
 0x27b   : > { %v1389_v51 = vpop.f32.mrf.mxu0 }
 0x27c   : > { %1516 = vtanh.f32 %v791_v50 }
 0x27d   : > { %v1511_v52 = vpop.eup %1510  ;;  %v795_v53 = vpop.f32.mrf.mxu0 }
 0x27e   : > { %840 = vst.msk [vmem:[%s1991_s13 + $0x18] sm:$0xff] %vm322_vm1, %v1511_v52  ;;  %v796_v54 = vadd.f32 %v1984_v28, %v795_v53 }
 0x27f   : > { %v1392_v55 = vpop.f32.mrf.mxu0 }
 0x280   : > { %1518 = vtanh.f32 %v796_v54 }
 0x281   : > { %v1513_v56 = vpop.eup %1512  ;;  %v800_v57 = vpop.f32.mrf.mxu0 }
 0x282   : > { %841 = vst.msk [vmem:[%s1991_s13 + $0x20] sm:$0xff] %vm322_vm1, %v1513_v56  ;;  %v801_v58 = vadd.f32 %v1984_v28, %v800_v57 }
 0x283   : > { %v1395_v59 = vpop.f32.mrf.mxu0 }
 0x284   : > { %1520 = vtanh.f32 %v801_v58 }
 0x285   : > { %v1515_v60 = vpop.eup %1514  ;;  %v805_v61 = vpop.f32.mrf.mxu0 }
 0x286   : > { %842 = vst.msk [vmem:[%s1991_s13 + $0x28] sm:$0xff] %vm322_vm1, %v1515_v60  ;;  %v806_v62 = vadd.f32 %v1984_v28, %v805_v61 }
 0x287   : > { %v1398_v63 = vpop.f32.mrf.mxu0 }
 0x288   : > { %1522 = vtanh.f32 %v806_v62 }
 0x289   : > { %v1517_v0 = vpop.eup %1516  ;;  %v810_v2 = vpop.f32.mrf.mxu0 }
 0x28a   : > { %843 = vst.msk [vmem:[%s1991_s13 + $0x30] sm:$0xff] %vm322_vm1, %v1517_v0  ;;  %v811_v3 = vadd.f32 %v1984_v28, %v810_v2 }
 0x28b   : > { %v1401_v4 = vpop.f32.mrf.mxu0 }
 0x28c   : > { %1524 = vtanh.f32 %v811_v3 }
 0x28d   : > { %v1519_v5 = vpop.eup %1518  ;;  %v815_v6 = vpop.f32.mrf.mxu0 }
 0x28e   : > { %844 = vst.msk [vmem:[%s1991_s13 + $0x38] sm:$0xff] %vm322_vm1, %v1519_v5  ;;  %v816_v7 = vadd.f32 %v1984_v28, %v815_v6 }
 0x28f   : > { %v1404_v8 = vpop.f32.mrf.mxu0 }
 0x290   : > { %1526 = vtanh.f32 %v816_v7 }
 0x291   : > { %v1521_v9 = vpop.eup %1520  ;;  %v820_v10 = vpop.f32.mrf.mxu0 }
 0x292   : > { %845 = vst.msk [vmem:[%s1991_s13 + $0x40] sm:$0xff] %vm322_vm1, %v1521_v9  ;;  %v821_v11 = vadd.f32 %v1984_v28, %v820_v10 }
 0x293   : > { %v1407_v12 = vpop.f32.mrf.mxu0 }
 0x294   : > { %1528 = vtanh.f32 %v821_v11 }
 0x295   : > { %v1523_v13 = vpop.eup %1522 }
 0x296   : > { %846 = vst.msk [vmem:[%s1991_s13 + $0x48] sm:$0xff] %vm322_vm1, %v1523_v13 }
 0x299   : > { %v1525_v14 = vpop.eup %1524 }
 0x29a   : > { %847 = vst.msk [vmem:[%s1991_s13 + $0x50] sm:$0xff] %vm322_vm1, %v1525_v14 }
 0x29d   : > { %v1527_v15 = vpop.eup %1526 }
 0x29e   : > { %848 = vst.msk [vmem:[%s1991_s13 + $0x58] sm:$0xff] %vm322_vm1, %v1527_v15  ;;  %856 = sbr.rel (!%p1689_p4) target bundleno = 728 (0x2d8), region = 52 }
 0x2a1   : > { %v1529_v16 = vpop.eup %1528 }
 0x2a2   : > { %849 = vst.msk [vmem:[%s1991_s13 + $0x60] sm:$0xff] %vm322_vm1, %v1529_v16 }
 0x2a3   : > { %s2133_s24 = smov (!%p859_p8, %s858_s24), 13 }
 0x2a4   : > { %s1137_s19 = sshll.u32 %s2133_s24, 7 }
 0x2a5   : > { %p1140_p9 = scmp.eq.s32.totalorder %s1137_s19, 0 }
 0x2a6   : > { %1530 = sdivrem.u32 (!%p1140_p9), %s2133_s24, 13 }
 0x2a7   : > { %867 = sbr.rel (%p1140_p9) target bundleno = 728 (0x2d8), region = 56 }
 0x2af   : > { %s2041_s9 = spop.drf %1530 }
 0x2b0   : > { %p1141_p10 = scmp.le.s32.totalorder %s2041_s9, 0 }
 0x2b1   : > { %s2126_s27 = smov (!%p1141_p10), %s2035_s17  ;;  %s2127_s12 = smov (!%p1141_p10), %s1991_s13 }
 0x2b2   : > { %1072 = sbr.rel (%p1141_p10) target bundleno = 703 (0x2bf), region = 132  ;;  %s2050_s18 = smov (!%p1141_p10), 0  }
 0x2b3   : > { %s2052_s20 = smov (!%p1141_p10), 0  }
 0x2b7 LB: >> { %v956_v17 = vld [vmem:[%s1596_s12] sm:$0xff]  ;;  %v958_v18 = vld [vmem:[%s1596_s12 + $0x8] sm:$0xff]  ;;  %v960_v19 = vld [vmem:[%s1596_s12 + $0x10] sm:$0xff]  ;;  %s982_s21 = sadd.s32 1, %s1600_s18  ;;  %s950_s20 = sadd.s32 1, %s1604_s20   ;;  %s1604_s20 = sphi %s2052_s20, %s950_s20   ;;  %s1600_s18 = sphi %s2050_s18, %s2128_s18   ;;  %s1596_s12 = sphi %s2127_s12, %s987_s12   ;;  %s1592_s27 = sphi %s2126_s27, %s988_s27  }
 0x2b8   : >> { %957 = vst [vmem:[%s1592_s27] sm:$0xff] %v956_v17  ;;  %959 = vst [vmem:[%s1592_s27 + $0x8] sm:$0xff] %v958_v18  ;;  %v962_v20 = vld [vmem:[%s1596_s12 + $0x18] sm:$0xff]  ;;  %v964_v21 = vld [vmem:[%s1596_s12 + $0x20] sm:$0xff]  ;;  %p983_p11 = scmp.ge.s32.totalorder %s982_s21, %s2041_s9  ;;  %p949_p12 = scmp.ge.s32.totalorder %s950_s20, %s2041_s9 }
 0x2b9   : >> { %961 = vst [vmem:[%s1592_s27 + $0x10] sm:$0xff] %v960_v19  ;;  %v966_v22 = vld [vmem:[%s1596_s12 + $0x28] sm:$0xff]  ;;  %963 = vst [vmem:[%s1592_s27 + $0x18] sm:$0xff] %v962_v20  ;;  %v968_v23 = vld [vmem:[%s1596_s12 + $0x30] sm:$0xff] }
 0x2ba   : >> { %965 = vst [vmem:[%s1592_s27 + $0x20] sm:$0xff] %v964_v21  ;;  %967 = vst [vmem:[%s1592_s27 + $0x28] sm:$0xff] %v966_v22  ;;  %v970_v24 = vld [vmem:[%s1596_s12 + $0x38] sm:$0xff]  ;;  %v972_v25 = vld [vmem:[%s1596_s12 + $0x40] sm:$0xff]  ;;  %s2135_s21 = smov (%p983_p11, %s982_s21), 0  ;;  %952 = sbr.rel (!%p949_p12) target bundleno = 695 (0x2b7), region = 138 }
 0x2bb   : >> { %969 = vst [vmem:[%s1592_s27 + $0x30] sm:$0xff] %v968_v23  ;;  %971 = vst [vmem:[%s1592_s27 + $0x38] sm:$0xff] %v970_v24  ;;  %v974_v26 = vld [vmem:[%s1596_s12 + $0x48] sm:$0xff]  ;;  %v976_v27 = vld [vmem:[%s1596_s12 + $0x50] sm:$0xff]  ;;  %s985_s22 = smul.u32 104, %s2135_s21  ;;  %s2128_s18 = smov %s2135_s21 }
 0x2bc   : >> { %973 = vst [vmem:[%s1592_s27 + $0x40] sm:$0xff] %v972_v25  ;;  %v978_v28 = vld [vmem:[%s1596_s12 + $0x58] sm:$0xff]  ;;  %975 = vst [vmem:[%s1592_s27 + $0x48] sm:$0xff] %v974_v26  ;;  %v980_v29 = vld [vmem:[%s1596_s12 + $0x60] sm:$0xff] }
 0x2bd   : >> { %977 = vst [vmem:[%s1592_s27 + $0x50] sm:$0xff] %v976_v27  ;;  %979 = vst [vmem:[%s1592_s27 + $0x58] sm:$0xff] %v978_v28  ;;  %s987_s12 = scalar_lea.vmem %s1991_s13, %s985_s22 [#allocation2]  }
 0x2be   : >> { %981 = vst [vmem:[%s1592_s27 + $0x60] sm:$0xff] %v980_v29  ;;  %s988_s27 = scalar_lea.vmem %s2035_s17, %s985_s22  }
 0x2bf PF: > { %1532 = sdivrem.u32 %s2133_s24, 13 }
 0x2c0   : > { %s1142_s23 = smul.u32 104, %s2041_s9 }
 0x2c2   : > { %s993_s26 = scalar_lea.vmem %s1991_s13, %s1142_s23 [#allocation2]   ;;  %s995_s29 = scalar_lea.vmem %s2035_s17, %s1142_s23  }
 0x2c8   : > { %s1533_s30 = spop.drf %1532 }
 0x2c9   : > { %p1144_p13 = scmp.le.s32.totalorder %s1533_s30, 0 }
 0x2ca   : > { %s1606_s10 = smov (!%p1144_p13), %s995_s29   ;;  %s1610_s11 = smov (!%p1144_p13), %s993_s26  }
 0x2cb   : > { %1086 = sbr.rel (%p1144_p13) target bundleno = 728 (0x2d8), region = 143  ;;  %s1614_s14 = smov (!%p1144_p13), 0  }
 0x2cc   : > { %s1618_s15 = smov (!%p1144_p13), 0  }
 0x2d0 LB: >> { %v1005_v30 = vld [vmem:[%s1612_s11] sm:$0xff]  ;;  %s1007_s16 = sadd.s32 1, %s1616_s14  ;;  %s999_s15 = sadd.s32 1, %s1620_s15   ;;  %s1620_s15 = sphi %s1618_s15, %s999_s15   ;;  %s1616_s14 = sphi %s1614_s14, %s1615_s14   ;;  %s1612_s11 = sphi %s1610_s11, %s1012_s11   ;;  %s1608_s10 = sphi %s1606_s10, %s1013_s10  }
 0x2d1   : >> { %1006 = vst [vmem:[%s1608_s10] sm:$0xff] %v1005_v30  ;;  %p1008_p0 = scmp.ge.s32.totalorder %s1007_s16, %s1533_s30  ;;  %p998_p1 = scmp.ge.s32.totalorder %s999_s15, %s1533_s30 }
 0x2d3   : >> { %s2137_s16 = smov (%p1008_p0, %s1007_s16), 0  ;;  %1001 = sbr.rel (!%p998_p1) target bundleno = 720 (0x2d0), region = 149 }
 0x2d4   : >> { %s1145_s13 = sshll.u32 %s2137_s16, 3  ;;  %s1615_s14 = smov %s2137_s16  }
 0x2d5   : >> { %s1012_s11 = scalar_lea.vmem %s993_s26, %s1145_s13 [#allocation2]   ;;  %s1013_s10 = scalar_lea.vmem %s995_s29, %s1145_s13  }
 0x2d8 PF: > { %p14_p2 = scmp.ge.s32.totalorder %s1679_s28, 4   ;;  %s2129_s24 = smov %s1584_s25 }
 0x2d9   : > { %s2130_s25 = smov %s1687_s8  ;;  %s2131_s26 = smov %s1679_s28 }
 0x2da   :  { %16 = sbr.rel (!%p14_p2) target bundleno = 2 (0x2), region = 160 }

</bundles_post_ra>
